<compile_context>
chip_gen: v7x
topology: tpu7x:2x2x1
jax: 0.10.0
libtpu: 0.0.40
codegen_flags: <defaults>
</compile_context>

<pallas_src>
import numpy as np
import jax
import jax.numpy as jnp
from jax import lax
from jax.experimental import pallas as pl
from jax.experimental.pallas import tpu as pltpu

EPS = 1e-5


def _pre_residual_kernel(x_ref, s1_ref, b1_ref, w1_ref, s2_ref, b2_ref, w2_ref,
                         out_ref, pad_ref):
    Nb, R, L = x_ref.shape

    # Zero only the two halo rows (full-lane, unmasked stores).  Re-done every
    # grid step: scratch is per-core and the grid axis is "parallel", so there
    # is no safe "first step only" gate.
    zrow = jnp.zeros((1, L), jnp.float32)
    pad_ref[0:1, :] = zrow
    pad_ref[R + 1:R + 2, :] = zrow

    def conv3x3(b_ref):
        # 3 accumulating MXU matmuls over packed-row shifts; the banded RHS
        # handles horizontal taps, zero-padding columns and channel mixing.
        acc = jnp.dot(pad_ref[0:R, :], b_ref[0],
                      preferred_element_type=jnp.float32)
        acc += jnp.dot(pad_ref[1:R + 1, :], b_ref[1],
                       preferred_element_type=jnp.float32)
        acc += jnp.dot(pad_ref[2:R + 2, :], b_ref[2],
                       preferred_element_type=jnp.float32)
        return acc

    # Static unroll over the Nb images in this block (Nb is capped small).
    for n in range(Nb):
        x = x_ref[n]                                              # (R, L)
        # BatchNorm1 (folded, lane-tiled) + ReLU, written into the interior.
        pad_ref[1:R + 1, :] = jnp.maximum(x * s1_ref[...] + b1_ref[...], 0.0)
        z1 = conv3x3(w1_ref)                                      # conv #1
        # BatchNorm2 + ReLU; reuse the same scratch (valid: Cout == Cin).
        pad_ref[1:R + 1, :] = jnp.maximum(z1 * s2_ref[...] + b2_ref[...], 0.0)
        z2 = conv3x3(w2_ref)                                      # conv #2
        # Dropout (eval: identity) + residual add; lane-dense store.
        out_ref[n] = z2 + x


def _pick_row_packing(h, wc, max_lanes=512):
    """Smallest divisor P of H with P*W*C a multiple of 128 (full lane width),
    capped so the banded weight matrices stay small.  Falls back to 1."""
    if wc % 128 == 0:
        return 1
    for p in range(1, h + 1):
        if h % p == 0 and (p * wc) % 128 == 0 and p * wc <= max_lanes:
            return p
    return 1


def _pick_images_per_step(n, cap=8):
    """Largest divisor of N (<= cap) that still leaves >= 2 grid steps (v7x)."""
    for nb in range(min(n, cap), 0, -1):
        if n % nb == 0 and (n // nb >= 2 or n == 1):
            return nb
    return 1


def _banded_conv_matrix(w, P, W, Cin, Cout):
    """PyTorch conv weight (Cout, Cin, 3, 3) -> banded block-Toeplitz matrices
    B of shape (3, P*W*Cin, P*W*Cout), one per packed-row shift d-1 in {-1,0,1},
    acting on packed rows whose lane layout is (q, w, cin)."""
    # sel[d, dh, q, p] = 1 iff dh == (d-1)*P + q - p + 1
    sel = np.zeros((3, 3, P, P), np.float32)
    for d in range(3):
        for q in range(P):
            for p in range(P):
                dh = (d - 1) * P + q - p + 1
                if 0 <= dh <= 2:
                    sel[d, dh, q, p] = 1.0
    # band[dw, w_in, w_out] = 1 iff w_in == w_out + dw - 1  (implicit zero pad)
    band = np.zeros((3, W, W), np.float32)
    for dw in range(3):
        for wo in range(W):
            wi = wo + dw - 1
            if 0 <= wi < W:
                band[dw, wi, wo] = 1.0
    B = jnp.einsum('dhqp,vio,cahv->dqiapoc',
                   jnp.asarray(sel), jnp.asarray(band), w.astype(jnp.float32))
    return B.reshape(3, P * W * Cin, P * W * Cout)


def pre_residual_block(x_nchw, params):
    """x_nchw: (N, C, H, W) float32. Returns (N, C, H, W)."""
    x_nhwc = jnp.transpose(x_nchw, (0, 2, 3, 1)).astype(jnp.float32)   # NHWC
    N, H, W, C = x_nhwc.shape
    Cout = C                                   # output_reduction=False
    P = _pick_row_packing(H, W * C)
    R = H // P
    Li = P * W * C
    Lo = P * W * Cout
    assert Li == Lo, "equal-channel config required (scratch reuse relies on it)"

    # Fold BN (running stats + affine) into per-channel scale/bias, tiled to
    # the packed-lane layout (lane = q*W*C + w*C + c).
    s1 = params["gamma1"] / jnp.sqrt(params["var1"] + EPS)
    b1 = params["beta1"] - params["mean1"] * s1
    s2 = params["gamma2"] / jnp.sqrt(params["var2"] + EPS)
    b2 = params["beta2"] - params["mean2"] * s2
    s1t = jnp.tile(s1, P * W).reshape(1, Li)
    b1t = jnp.tile(b1, P * W).reshape(1, Li)
    s2t = jnp.tile(s2, P * W).reshape(1, Lo)
    b2t = jnp.tile(b2, P * W).reshape(1, Lo)

    # Banded block-Toeplitz conv matrices (built once; grid-invariant blocks).
    B1 = _banded_conv_matrix(params["w1"], P, W, C, Cout)
    B2 = _banded_conv_matrix(params["w2"], P, W, Cout, Cout)

    x_packed = x_nhwc.reshape(N, R, Li)        # lane-dense HBM layout

    Nb = _pick_images_per_step(N)
    grid = (N // Nb,)

    # Explicit per-step VMEM budget (double-buffered blocks + weights + scratch),
    # clamped to stay inside every generation's scoped-VMEM default (<= 32 MiB).
    est = 4 * (2 * Nb * R * Li + 2 * Nb * R * Lo
               + 2 * 3 * (Li * Lo + Lo * Lo)
               + 2 * (Li + Lo)
               + (R + 2) * max(Li, Lo))
    vmem_limit = int(min(max(4 * est, 8 << 20), 32 << 20))

    out = pl.pallas_call(
        _pre_residual_kernel,
        out_shape=jax.ShapeDtypeStruct((N, R, Lo), jnp.float32),
        grid=grid,
        in_specs=[
            pl.BlockSpec((Nb, R, Li), lambda g: (g, 0, 0)),
            pl.BlockSpec((1, Li), lambda g: (0, 0)),
            pl.BlockSpec((1, Li), lambda g: (0, 0)),
            pl.BlockSpec((3, Li, Lo), lambda g: (0, 0, 0)),
            pl.BlockSpec((1, Lo), lambda g: (0, 0)),
            pl.BlockSpec((1, Lo), lambda g: (0, 0)),
            pl.BlockSpec((3, Lo, Lo), lambda g: (0, 0, 0)),
        ],
        out_specs=pl.BlockSpec((Nb, R, Lo), lambda g: (g, 0, 0)),
        scratch_shapes=[pltpu.VMEM((R + 2, max(Li, Lo)), jnp.float32)],
        compiler_params=pltpu.CompilerParams(
            dimension_semantics=("parallel",),
            vmem_limit_bytes=vmem_limit),
    )(x_packed, s1t, b1t, B1, s2t, b2t, B2)

    out_nhwc = out.reshape(N, H, W, Cout)
    return jnp.transpose(out_nhwc, (0, 3, 1, 2))   # back to NCHW


def reference_forward(x_nchw, params):
    """Pure-JAX reference (same eval-mode semantics) for correctness checking."""
    x = jnp.transpose(x_nchw, (0, 2, 3, 1)).astype(jnp.float32)  # NHWC
    w1 = jnp.transpose(params["w1"], (2, 3, 1, 0))
    w2 = jnp.transpose(params["w2"], (2, 3, 1, 0))
    dn = ("NHWC", "HWIO", "NHWC")

    def bn(v, g, b, m, var):
        return (v - m) / jnp.sqrt(var + EPS) * g + b

    y1 = jnp.maximum(bn(x, params["gamma1"], params["beta1"],
                        params["mean1"], params["var1"]), 0.0)
    z = lax.conv_general_dilated(y1, w1, (1, 1), [(1, 1), (1, 1)],
                                 dimension_numbers=dn)
    y2 = jnp.maximum(bn(z, params["gamma2"], params["beta2"],
                        params["mean2"], params["var2"]), 0.0)
    z2 = lax.conv_general_dilated(y2, w2, (1, 1), [(1, 1), (1, 1)],
                                  dimension_numbers=dn)
    out = z2 + x
    return jnp.transpose(out, (0, 3, 1, 2))


if __name__ == "__main__":
    key = jax.random.PRNGKey(0)
    N, C, H, W = 2, 4, 16, 16  # input_count = 4, output_reduction=False
    ks = jax.random.split(key, 12)

    x = jax.random.normal(ks[0], (N, C, H, W), jnp.float32)

    params = {
        # BatchNorm2d(input_count)
        "gamma1": jax.random.normal(ks[1], (C,), jnp.float32) * 0.1 + 1.0,
        "beta1":  jax.random.normal(ks[2], (C,), jnp.float32) * 0.1,
        "mean1":  jax.random.normal(ks[3], (C,), jnp.float32) * 0.1,
        "var1":   jnp.abs(jax.random.normal(ks[4], (C,), jnp.float32)) * 0.1 + 1.0,
        # Conv2d(C, C, 3, padding=1, bias=False): weight (Cout, Cin, 3, 3)
        "w1": jax.random.normal(ks[5], (C, C, 3, 3), jnp.float32) * 0.1,
        # BatchNorm2d(output_count)
        "gamma2": jax.random.normal(ks[6], (C,), jnp.float32) * 0.1 + 1.0,
        "beta2":  jax.random.normal(ks[7], (C,), jnp.float32) * 0.1,
        "mean2":  jax.random.normal(ks[8], (C,), jnp.float32) * 0.1,
        "var2":   jnp.abs(jax.random.normal(ks[9], (C,), jnp.float32)) * 0.1 + 1.0,
        # Conv2d(C, C, 3, padding=1, bias=False)
        "w2": jax.random.normal(ks[10], (C, C, 3, 3), jnp.float32) * 0.1,
    }

    out = jax.jit(pre_residual_block)(x, params)
    out = jax.block_until_ready(out)

    ref = jax.block_until_ready(reference_forward(x, params))
    assert out.shape == (N, C, H, W)
    err = float(jnp.max(jnp.abs(out - ref)))
    assert jnp.allclose(out, ref, atol=1e-4, rtol=1e-4), f"max abs err = {err}"

    print("KERNEL_OK")
</pallas_src>

<mosaic_0001>
module attributes {stable_mosaic.version = 11 : i64} {
  func.func @_pre_residual_kernel(%arg0: i32, %arg1: memref<1x8x128xf32, #tpu.memory_space<vmem>>, %arg2: memref<1x128xf32, #tpu.memory_space<vmem>>, %arg3: memref<1x128xf32, #tpu.memory_space<vmem>>, %arg4: memref<3x128x128xf32, #tpu.memory_space<vmem>>, %arg5: memref<1x128xf32, #tpu.memory_space<vmem>>, %arg6: memref<1x128xf32, #tpu.memory_space<vmem>>, %arg7: memref<3x128x128xf32, #tpu.memory_space<vmem>>, %arg8: memref<1x8x128xf32, #tpu.memory_space<vmem>>, %arg9: memref<10x128xf32, #tpu.memory_space<vmem>>) attributes {dimension_semantics = [#tpu.dimension_semantics<parallel>], iteration_bounds = array<i64: 2>, scalar_prefetch = 0 : i64, scratch_operands = 1 : i64, tpu.core_type = #tpu.core_type<tc>, window_params = [{transform_indices = @transform_0, window_bounds = array<i64: 1, 8, 128>}, {pipeline_mode = #tpu.pipeline_mode<synchronous>, transform_indices = @transform_1, window_bounds = array<i64: 1, 128>}, {pipeline_mode = #tpu.pipeline_mode<synchronous>, transform_indices = @transform_2, window_bounds = array<i64: 1, 128>}, {pipeline_mode = #tpu.pipeline_mode<synchronous>, transform_indices = @transform_3, window_bounds = array<i64: 3, 128, 128>}, {pipeline_mode = #tpu.pipeline_mode<synchronous>, transform_indices = @transform_4, window_bounds = array<i64: 1, 128>}, {pipeline_mode = #tpu.pipeline_mode<synchronous>, transform_indices = @transform_5, window_bounds = array<i64: 1, 128>}, {pipeline_mode = #tpu.pipeline_mode<synchronous>, transform_indices = @transform_6, window_bounds = array<i64: 3, 128, 128>}, {transform_indices = @transform_7, window_bounds = array<i64: 1, 8, 128>}]} {
    %cst = arith.constant 0.000000e+00 : f32
    %0 = vector.broadcast %cst : f32 to vector<1x128xf32>
    %c0 = arith.constant 0 : index
    %c0_0 = arith.constant 0 : index
    %1 = vector.load %arg9[%c0, %c0_0] : memref<10x128xf32, #tpu.memory_space<vmem>>, vector<1x128xf32>
    tpu.vector_store %arg9[%c0, %c0_0], %0 {strides = array<i32>} : memref<10x128xf32, #tpu.memory_space<vmem>>, vector<1x128xf32>,
    %c9 = arith.constant 9 : index
    %c0_1 = arith.constant 0 : index
    %2 = vector.load %arg9[%c9, %c0_1] : memref<10x128xf32, #tpu.memory_space<vmem>>, vector<1x128xf32>
    tpu.vector_store %arg9[%c9, %c0_1], %0 {strides = array<i32>} : memref<10x128xf32, #tpu.memory_space<vmem>>, vector<1x128xf32>,
    %c0_2 = arith.constant 0 : index
    %c0_3 = arith.constant 0 : index
    %c0_4 = arith.constant 0 : index
    %3 = vector.load %arg1[%c0_2, %c0_3, %c0_4] : memref<1x8x128xf32, #tpu.memory_space<vmem>>, vector<1x8x128xf32>
    %4 = vector.shape_cast %3 : vector<1x8x128xf32> to vector<8x128xf32>
    %c0_5 = arith.constant 0 : index
    %c0_6 = arith.constant 0 : index
    %5 = vector.load %arg2[%c0_5, %c0_6] : memref<1x128xf32, #tpu.memory_space<vmem>>, vector<1x128xf32>
    %6 = vector.broadcast %5 : vector<1x128xf32> to vector<8x128xf32>
    %7 = arith.mulf %4, %6 : vector<8x128xf32>
    %c0_7 = arith.constant 0 : index
    %c0_8 = arith.constant 0 : index
    %8 = vector.load %arg3[%c0_7, %c0_8] : memref<1x128xf32, #tpu.memory_space<vmem>>, vector<1x128xf32>
    %9 = vector.broadcast %8 : vector<1x128xf32> to vector<8x128xf32>
    %10 = arith.addf %7, %9 : vector<8x128xf32>
    %cst_9 = arith.constant 0.000000e+00 : f32
    %11 = vector.broadcast %cst_9 : f32 to vector<8x128xf32>
    %12 = arith.maximumf %10, %11 : vector<8x128xf32>
    %c1 = arith.constant 1 : index
    %c0_10 = arith.constant 0 : index
    %13 = vector.load %arg9[%c1, %c0_10] : memref<10x128xf32, #tpu.memory_space<vmem>>, vector<8x128xf32>
    tpu.vector_store %arg9[%c1, %c0_10], %12 {strides = array<i32>} : memref<10x128xf32, #tpu.memory_space<vmem>>, vector<8x128xf32>,
    %c0_11 = arith.constant 0 : index
    %c0_12 = arith.constant 0 : index
    %14 = vector.load %arg9[%c0_11, %c0_12] : memref<10x128xf32, #tpu.memory_space<vmem>>, vector<8x128xf32>
    %c0_13 = arith.constant 0 : index
    %c0_14 = arith.constant 0 : index
    %c0_15 = arith.constant 0 : index
    %15 = vector.load %arg4[%c0_13, %c0_14, %c0_15] : memref<3x128x128xf32, #tpu.memory_space<vmem>>, vector<1x128x128xf32>
    %16 = vector.shape_cast %15 : vector<1x128x128xf32> to vector<128x128xf32>
    %cst_16 = arith.constant dense<0.000000e+00> : vector<8x128xf32>
    %17 = tpu.matmul %14, %16, %cst_16 {dimension_numbers = #tpu.dot_dimension_numbers<[1], [0], [0], [1], [0, 0, 1, 1], [], []>} : vector<8x128xf32>, vector<128x128xf32>, vector<8x128xf32> -> vector<8x128xf32>
    %c1_17 = arith.constant 1 : index
    %c0_18 = arith.constant 0 : index
    %18 = vector.load %arg9[%c1_17, %c0_18] : memref<10x128xf32, #tpu.memory_space<vmem>>, vector<8x128xf32>
    %c1_19 = arith.constant 1 : index
    %c0_20 = arith.constant 0 : index
    %c0_21 = arith.constant 0 : index
    %19 = vector.load %arg4[%c1_19, %c0_20, %c0_21] : memref<3x128x128xf32, #tpu.memory_space<vmem>>, vector<1x128x128xf32>
    %20 = vector.shape_cast %19 : vector<1x128x128xf32> to vector<128x128xf32>
    %cst_22 = arith.constant dense<0.000000e+00> : vector<8x128xf32>
    %21 = tpu.matmul %18, %20, %cst_22 {dimension_numbers = #tpu.dot_dimension_numbers<[1], [0], [0], [1], [0, 0, 1, 1], [], []>} : vector<8x128xf32>, vector<128x128xf32>, vector<8x128xf32> -> vector<8x128xf32>
    %22 = arith.addf %17, %21 : vector<8x128xf32>
    %c2 = arith.constant 2 : index
    %c0_23 = arith.constant 0 : index
    %23 = vector.load %arg9[%c2, %c0_23] : memref<10x128xf32, #tpu.memory_space<vmem>>, vector<8x128xf32>
    %c2_24 = arith.constant 2 : index
    %c0_25 = arith.constant 0 : index
    %c0_26 = arith.constant 0 : index
    %24 = vector.load %arg4[%c2_24, %c0_25, %c0_26] : memref<3x128x128xf32, #tpu.memory_space<vmem>>, vector<1x128x128xf32>
    %25 = vector.shape_cast %24 : vector<1x128x128xf32> to vector<128x128xf32>
    %cst_27 = arith.constant dense<0.000000e+00> : vector<8x128xf32>
    %26 = tpu.matmul %23, %25, %cst_27 {dimension_numbers = #tpu.dot_dimension_numbers<[1], [0], [0], [1], [0, 0, 1, 1], [], []>} : vector<8x128xf32>, vector<128x128xf32>, vector<8x128xf32> -> vector<8x128xf32>
    %27 = arith.addf %22, %26 : vector<8x128xf32>
    %c0_28 = arith.constant 0 : index
    %c0_29 = arith.constant 0 : index
    %28 = vector.load %arg5[%c0_28, %c0_29] : memref<1x128xf32, #tpu.memory_space<vmem>>, vector<1x128xf32>
    %29 = vector.broadcast %28 : vector<1x128xf32> to vector<8x128xf32>
    %30 = arith.mulf %27, %29 : vector<8x128xf32>
    %c0_30 = arith.constant 0 : index
    %c0_31 = arith.constant 0 : index
    %31 = vector.load %arg6[%c0_30, %c0_31] : memref<1x128xf32, #tpu.memory_space<vmem>>, vector<1x128xf32>
    %32 = vector.broadcast %31 : vector<1x128xf32> to vector<8x128xf32>
    %33 = arith.addf %30, %32 : vector<8x128xf32>
    %cst_32 = arith.constant 0.000000e+00 : f32
    %34 = vector.broadcast %cst_32 : f32 to vector<8x128xf32>
    %35 = arith.maximumf %33, %34 : vector<8x128xf32>
    %c1_33 = arith.constant 1 : index
    %c0_34 = arith.constant 0 : index
    %36 = vector.load %arg9[%c1_33, %c0_34] : memref<10x128xf32, #tpu.memory_space<vmem>>, vector<8x128xf32>
    tpu.vector_store %arg9[%c1_33, %c0_34], %35 {strides = array<i32>} : memref<10x128xf32, #tpu.memory_space<vmem>>, vector<8x128xf32>,
    %c0_35 = arith.constant 0 : index
    %c0_36 = arith.constant 0 : index
    %37 = vector.load %arg9[%c0_35, %c0_36] : memref<10x128xf32, #tpu.memory_space<vmem>>, vector<8x128xf32>
    %c0_37 = arith.constant 0 : index
    %c0_38 = arith.constant 0 : index
    %c0_39 = arith.constant 0 : index
    %38 = vector.load %arg7[%c0_37, %c0_38, %c0_39] : memref<3x128x128xf32, #tpu.memory_space<vmem>>, vector<1x128x128xf32>
    %39 = vector.shape_cast %38 : vector<1x128x128xf32> to vector<128x128xf32>
    %cst_40 = arith.constant dense<0.000000e+00> : vector<8x128xf32>
    %40 = tpu.matmul %37, %39, %cst_40 {dimension_numbers = #tpu.dot_dimension_numbers<[1], [0], [0], [1], [0, 0, 1, 1], [], []>} : vector<8x128xf32>, vector<128x128xf32>, vector<8x128xf32> -> vector<8x128xf32>
    %c1_41 = arith.constant 1 : index
    %c0_42 = arith.constant 0 : index
    %41 = vector.load %arg9[%c1_41, %c0_42] : memref<10x128xf32, #tpu.memory_space<vmem>>, vector<8x128xf32>
    %c1_43 = arith.constant 1 : index
    %c0_44 = arith.constant 0 : index
    %c0_45 = arith.constant 0 : index
    %42 = vector.load %arg7[%c1_43, %c0_44, %c0_45] : memref<3x128x128xf32, #tpu.memory_space<vmem>>, vector<1x128x128xf32>
    %43 = vector.shape_cast %42 : vector<1x128x128xf32> to vector<128x128xf32>
    %cst_46 = arith.constant dense<0.000000e+00> : vector<8x128xf32>
    %44 = tpu.matmul %41, %43, %cst_46 {dimension_numbers = #tpu.dot_dimension_numbers<[1], [0], [0], [1], [0, 0, 1, 1], [], []>} : vector<8x128xf32>, vector<128x128xf32>, vector<8x128xf32> -> vector<8x128xf32>
    %45 = arith.addf %40, %44 : vector<8x128xf32>
    %c2_47 = arith.constant 2 : index
    %c0_48 = arith.constant 0 : index
    %46 = vector.load %arg9[%c2_47, %c0_48] : memref<10x128xf32, #tpu.memory_space<vmem>>, vector<8x128xf32>
    %c2_49 = arith.constant 2 : index
    %c0_50 = arith.constant 0 : index
    %c0_51 = arith.constant 0 : index
    %47 = vector.load %arg7[%c2_49, %c0_50, %c0_51] : memref<3x128x128xf32, #tpu.memory_space<vmem>>, vector<1x128x128xf32>
    %48 = vector.shape_cast %47 : vector<1x128x128xf32> to vector<128x128xf32>
    %cst_52 = arith.constant dense<0.000000e+00> : vector<8x128xf32>
    %49 = tpu.matmul %46, %48, %cst_52 {dimension_numbers = #tpu.dot_dimension_numbers<[1], [0], [0], [1], [0, 0, 1, 1], [], []>} : vector<8x128xf32>, vector<128x128xf32>, vector<8x128xf32> -> vector<8x128xf32>
    %50 = arith.addf %45, %49 : vector<8x128xf32>
    %51 = arith.addf %50, %4 : vector<8x128xf32>
    %c0_53 = arith.constant 0 : index
    %c0_54 = arith.constant 0 : index
    %c0_55 = arith.constant 0 : index
    %52 = vector.load %arg8[%c0_53, %c0_54, %c0_55] : memref<1x8x128xf32, #tpu.memory_space<vmem>>, vector<1x8x128xf32>
    %53 = vector.shape_cast %52 : vector<1x8x128xf32> to vector<8x128xf32>
    %54 = vector.shape_cast %51 : vector<8x128xf32> to vector<1x8x128xf32>
    tpu.vector_store %arg8[%c0_53, %c0_54, %c0_55], %54 {strides = array<i32>} : memref<1x8x128xf32, #tpu.memory_space<vmem>>, vector<1x8x128xf32>,
    return
  }
  func.func @transform_0(%arg0: i32) -> (i32, i32, i32) {
    %c0_i32 = arith.constant 0 : i32
    %c0_i32_0 = arith.constant 0 : i32
    %c0_i32_1 = arith.constant 0 : i32
    return %arg0, %c0_i32, %c0_i32_0 : i32, i32, i32
  }
  func.func @transform_1(%arg0: i32) -> (i32, i32) {
    %c0_i32 = arith.constant 0 : i32
    %c0_i32_0 = arith.constant 0 : i32
    %c0_i32_1 = arith.constant 0 : i32
    return %c0_i32, %c0_i32_0 : i32, i32
  }
  func.func @transform_2(%arg0: i32) -> (i32, i32) {
    %c0_i32 = arith.constant 0 : i32
    %c0_i32_0 = arith.constant 0 : i32
    %c0_i32_1 = arith.constant 0 : i32
    return %c0_i32, %c0_i32_0 : i32, i32
  }
  func.func @transform_3(%arg0: i32) -> (i32, i32, i32) {
    %c0_i32 = arith.constant 0 : i32
    %c0_i32_0 = arith.constant 0 : i32
    %c0_i32_1 = arith.constant 0 : i32
    %c0_i32_2 = arith.constant 0 : i32
    return %c0_i32, %c0_i32_0, %c0_i32_1 : i32, i32, i32
  }
  func.func @transform_4(%arg0: i32) -> (i32, i32) {
    %c0_i32 = arith.constant 0 : i32
    %c0_i32_0 = arith.constant 0 : i32
    %c0_i32_1 = arith.constant 0 : i32
    return %c0_i32, %c0_i32_0 : i32, i32
  }
  func.func @transform_5(%arg0: i32) -> (i32, i32) {
    %c0_i32 = arith.constant 0 : i32
    %c0_i32_0 = arith.constant 0 : i32
    %c0_i32_1 = arith.constant 0 : i32
    return %c0_i32, %c0_i32_0 : i32, i32
  }
  func.func @transform_6(%arg0: i32) -> (i32, i32, i32) {
    %c0_i32 = arith.constant 0 : i32
    %c0_i32_0 = arith.constant 0 : i32
    %c0_i32_1 = arith.constant 0 : i32
    %c0_i32_2 = arith.constant 0 : i32
    return %c0_i32, %c0_i32_0, %c0_i32_1 : i32, i32, i32
  }
  func.func @transform_7(%arg0: i32) -> (i32, i32, i32) {
    %c0_i32 = arith.constant 0 : i32
    %c0_i32_0 = arith.constant 0 : i32
    %c0_i32_1 = arith.constant 0 : i32
    return %arg0, %c0_i32, %c0_i32_0 : i32, i32, i32
  }
}

</mosaic_0001>

<bundles_post_ra>
// kernel: tile.23
= control target key start
LH: loop header
LB: loop body
LE: loop exit
PB: predicated region body
PF: predicated region fallthrough
CT: control target
= control target key end

     0   :  { %s40_s0 = inlined_call_operand.vmem [shape: f32[4], index: 0, kind: input, shape index: {}]   ;;  %s41_s1 = inlined_call_operand.vmem [shape: f32[32,4], index: 1, kind: output, shape index: {}]  }
   0x1   :  { %v4_v0 = vld [vmem:[%s40_s0] ss:$0 sm:$0xff] }
   0x2   :  { %5 = vst [vmem:[%s41_s1] sm:$0xff] %v4_v0  ;;  %12 = vst [vmem:[%s41_s1 + $0x8] sm:$0xff] %v4_v0 }
   0x3   :  { %13 = vst [vmem:[%s41_s1 + $0x10] sm:$0xff] %v4_v0  ;;  %14 = vst [vmem:[%s41_s1 + $0x18] sm:$0xff] %v4_v0 }

// kernel: tile.24
= control target key start
LH: loop header
LB: loop body
LE: loop exit
PB: predicated region body
PF: predicated region fallthrough
CT: control target
= control target key end

     0   :  { %s259_s10 = smov 124   ;;  %s260_s11 = smov 116   ;;  %vm3_vm0 = vcmask 31744   ;;  %vm9_vm1 = vcmask 1048544   ;;  %vm15_vm2 = vcmask 1015744   ;;  %vm21_vm3 = vcmask 982944   ;;  %s399_s0 = inlined_call_operand.vmem [shape: f32[32,4], index: 0, kind: input, shape index: {}]   ;;  %s400_s1 = inlined_call_operand.vmem [shape: f32[1,128], index: 1, kind: output, shape index: {}]  }
   0x1   :  { %v197_v0 = vld [vmem:[%s399_s0 + $0x1f] sm:$0x1]   ;;  %v199_v1 = vld [vmem:[%s399_s0 + $0x1d] sm:$0x1]   ;;  %v198_v2 = vld [vmem:[%s399_s0 + $0x1e] sm:$0x1]  }
   0x2   :  { %7 = vrot.lane.b32.xlu0 %v197_v0, %s259_s10  ;;  %19 = vrot.lane.b32.xlu1 %v199_v1, %s260_s11  ;;  %v200_v3 = vld [vmem:[%s399_s0 + $0x1c] sm:$0x1]   ;;  %s261_s16 = smov 120   ;;  %s262_s17 = smov 112   ;;  %v201_v4 = vld [vmem:[%s399_s0 + $0x1b] sm:$0x1]  }
   0x3   :  { %v202_v5 = vld [vmem:[%s399_s0 + $0x1a] sm:$0x1]   ;;  %s263_s22 = smov 108   ;;  %s264_s23 = smov 104   ;;  %v203_v6 = vld [vmem:[%s399_s0 + $0x19] sm:$0x1]  }
   0x4   :  { %v204_v7 = vld [vmem:[%s399_s0 + $0x18] sm:$0x1]   ;;  %s265_s28 = smov 100   ;;  %s266_s29 = smov 96   ;;  %v205_v8 = vld [vmem:[%s399_s0 + $0x17] sm:$0x1]  }
   0x5   :  { %v206_v9 = vld [vmem:[%s399_s0 + $0x16] sm:$0x1]   ;;  %v2_v10 = vld [vmem:[%s399_s0] sm:$0x1]   ;;  %s267_s7 = smov 92   ;;  %s268_s8 = smov 88  }
   0x6   :  { %13 = vrot.lane.b32.xlu0 %v198_v2, %s261_s16  ;;  %25 = vrot.lane.b32.xlu1 %v200_v3, %s262_s17  ;;  %4 = vst.msk [vmem:[#allocation0] sm:$0x1] %vm3_vm0, %v2_v10   ;;  %v207_v11 = vld [vmem:[%s399_s0 + $0x15] sm:$0x1]   ;;  %v208_v12 = vld [vmem:[%s399_s0 + $0x14] sm:$0x1]  }
   0x7   :  { %s269_s13 = smov 84   ;;  %s270_s14 = smov 80   ;;  %v209_v13 = vld [vmem:[%s399_s0 + $0x13] sm:$0x1]   ;;  %v210_v14 = vld [vmem:[%s399_s0 + $0x12] sm:$0x1]  }
   0x8   :  { %s271_s19 = smov 76   ;;  %s272_s20 = smov 72   ;;  %v211_v15 = vld [vmem:[%s399_s0 + $0x11] sm:$0x1]   ;;  %v212_v16 = vld [vmem:[%s399_s0 + $0x10] sm:$0x1]  }
   0x9   :  { %s273_s25 = smov 68   ;;  %s274_s26 = smov 64   ;;  %v213_v17 = vld [vmem:[%s399_s0 + $0xf] sm:$0x1]   ;;  %v214_v18 = vld [vmem:[%s399_s0 + $0xe] sm:$0x1]  }
   0xa   :  { %31 = vrot.lane.b32.xlu0 %v201_v4, %s263_s22  ;;  %37 = vrot.lane.b32.xlu1 %v202_v5, %s264_s23  ;;  %s275_s2 = smov 60   ;;  %s276_s3 = smov 56   ;;  %v215_v19 = vld [vmem:[%s399_s0 + $0xd] sm:$0x1]   ;;  %v216_v20 = vld [vmem:[%s399_s0 + $0xc] sm:$0x1]  }
   0xb   :  { %s278_s9 = smov 48   ;;  %v217_v21 = vld [vmem:[%s399_s0 + $0xb] sm:$0x1]   ;;  %v218_v22 = vld [vmem:[%s399_s0 + $0xa] sm:$0x1]   ;;  %s280_s15 = smov 40  }
   0xc   :  { %v219_v23 = vld [vmem:[%s399_s0 + $0x9] sm:$0x1]   ;;  %v220_v24 = vld [vmem:[%s399_s0 + $0x8] sm:$0x1]   ;;  %s282_s21 = smov 32   ;;  %s284_s27 = smov 24  }
   0xd   :  { %v221_v25 = vld [vmem:[%s399_s0 + $0x7] sm:$0x1]   ;;  %v222_v26 = vld [vmem:[%s399_s0 + $0x6] sm:$0x1]   ;;  %v223_v27 = vld [vmem:[%s399_s0 + $0x5] sm:$0x1]  }
   0xe   :  { %43 = vrot.lane.b32.xlu0 %v203_v6, %s265_s28  ;;  %49 = vrot.lane.b32.xlu1 %v204_v7, %s266_s29  ;;  %v224_v28 = vld [vmem:[%s399_s0 + $0x4] sm:$0x1]   ;;  %s286_s4 = smov 16   ;;  %v225_v29 = vld [vmem:[%s399_s0 + $0x3] sm:$0x1]   ;;  %s288_s10 = smov 8  }
   0xf   :  { %v226_v30 = vld [vmem:[%s399_s0 + $0x2] sm:$0x1]   ;;  %v227_v31 = vld [vmem:[%s399_s0 + $0x1] sm:$0x1]   ;;  %s289_s0 = smov 4   ;;  %vm27_vm4 = vcmask 950144  }
  0x10   :  { %vm33_vm5 = vcmask 917344   ;;  %vm39_vm6 = vcmask 884544   ;;  %vm45_vm7 = vcmask 851744   ;;  %vm51_vm8 = vcmask 818944  }
  0x11   :  { %vm57_vm9 = vcmask 786144   ;;  %vm63_vm10 = vcmask 753344   ;;  %vm69_vm11 = vcmask 720544   ;;  %vm75_vm12 = vcmask 687744  }
  0x12   :  { %55 = vrot.lane.b32.xlu0 %v205_v8, %s267_s7  ;;  %61 = vrot.lane.b32.xlu1 %v206_v9, %s268_s8  ;;  %s277_s8 = smov 52   ;;  %vm81_vm13 = vcmask 654944   ;;  %vm87_vm14 = vcmask 622144   ;;  %vm93_vm15 = vcmask 589344   ;;  %vm99_vm0 = vcmask 556544  }
  0x16   :  { %67 = vrot.lane.b32.xlu0 %v207_v11, %s269_s13  ;;  %73 = vrot.lane.b32.xlu1 %v208_v12, %s270_s14  ;;  %s279_s14 = smov 44  }
  0x1a   :  { %79 = vrot.lane.b32.xlu0 %v209_v13, %s271_s19  ;;  %85 = vrot.lane.b32.xlu1 %v210_v14, %s272_s20  ;;  %s281_s20 = smov 36  }
  0x1e   :  { %91 = vrot.lane.b32.xlu0 %v211_v15, %s273_s25  ;;  %97 = vrot.lane.b32.xlu1 %v212_v16, %s274_s26  ;;  %s283_s26 = smov 28  }
  0x22   :  { %103 = vrot.lane.b32.xlu0 %v213_v17, %s275_s2  ;;  %109 = vrot.lane.b32.xlu1 %v214_v18, %s276_s3  ;;  %s285_s3 = smov 20  }
  0x26   :  { %115 = vrot.lane.b32.xlu0 %v215_v19, %s277_s8  ;;  %121 = vrot.lane.b32.xlu1 %v216_v20, %s278_s9  ;;  %s287_s9 = smov 12  }
  0x2a   :  { %127 = vrot.lane.b32.xlu0 %v217_v21, %s279_s14  ;;  %133 = vrot.lane.b32.xlu1 %v218_v22, %s280_s15 }
  0x2e   :  { %139 = vrot.lane.b32.xlu0 %v219_v23, %s281_s20  ;;  %145 = vrot.lane.b32.xlu1 %v220_v24, %s282_s21 }
  0x32   :  { %151 = vrot.lane.b32.xlu0 %v221_v25, %s283_s26  ;;  %157 = vrot.lane.b32.xlu1 %v222_v26, %s284_s27 }
  0x36   :  { %163 = vrot.lane.b32.xlu0 %v223_v27, %s285_s3  ;;  %169 = vrot.lane.b32.xlu1 %v224_v28, %s286_s4 }
  0x3a   :  { %175 = vrot.lane.b32.xlu0 %v225_v29, %s287_s9  ;;  %181 = vrot.lane.b32.xlu1 %v226_v30, %s288_s10 }
  0x3e   :  { %187 = vrot.lane.b32.xlu0 %v227_v31, %s289_s0 }
  0x74   :  { %v8_v32 = vpop.permute.xlu0 %7   ;;  %v20_v33 = vpop.permute.xlu1 %19  }
  0x75   :  { %10 = vst.msk [vmem:[#allocation0] sm:$0x1] %vm9_vm1, %v8_v32   ;;  %vm105_vm1 = vcmask 523744  }
  0x78   :  { %v14_v34 = vpop.permute.xlu0 %13   ;;  %v26_v35 = vpop.permute.xlu1 %25  }
  0x79   :  { %16 = vst.msk [vmem:[#allocation0] sm:$0x1] %vm15_vm2, %v14_v34   ;;  %vm111_vm2 = vcmask 490944  }
  0x7a   :  { %22 = vst.msk [vmem:[#allocation0] sm:$0x1] %vm21_vm3, %v20_v33   ;;  %vm117_vm3 = vcmask 458144  }
  0x7b   :  { %28 = vst.msk [vmem:[#allocation0] sm:$0x1] %vm27_vm4, %v26_v35   ;;  %vm123_vm4 = vcmask 425344  }
  0x7c   :  { %v32_v36 = vpop.permute.xlu0 %31   ;;  %v38_v37 = vpop.permute.xlu1 %37  }
  0x7d   :  { %34 = vst.msk [vmem:[#allocation0] sm:$0x1] %vm33_vm5, %v32_v36   ;;  %vm129_vm5 = vcmask 392544  }
  0x7e   :  { %40 = vst.msk [vmem:[#allocation0] sm:$0x1] %vm39_vm6, %v38_v37   ;;  %vm135_vm6 = vcmask 359744  }
  0x80   :  { %v44_v38 = vpop.permute.xlu0 %43   ;;  %v50_v39 = vpop.permute.xlu1 %49  }
  0x81   :  { %46 = vst.msk [vmem:[#allocation0] sm:$0x1] %vm45_vm7, %v44_v38   ;;  %vm141_vm7 = vcmask 326944  }
  0x82   :  { %52 = vst.msk [vmem:[#allocation0] sm:$0x1] %vm51_vm8, %v50_v39   ;;  %vm147_vm8 = vcmask 294144  }
  0x84   :  { %v56_v40 = vpop.permute.xlu0 %55   ;;  %v62_v41 = vpop.permute.xlu1 %61  }
  0x85   :  { %58 = vst.msk [vmem:[#allocation0] sm:$0x1] %vm57_vm9, %v56_v40   ;;  %vm153_vm9 = vcmask 261344  }
  0x86   :  { %64 = vst.msk [vmem:[#allocation0] sm:$0x1] %vm63_vm10, %v62_v41   ;;  %vm159_vm10 = vcmask 228544  }
  0x88   :  { %v68_v42 = vpop.permute.xlu0 %67   ;;  %v74_v43 = vpop.permute.xlu1 %73  }
  0x89   :  { %70 = vst.msk [vmem:[#allocation0] sm:$0x1] %vm69_vm11, %v68_v42   ;;  %vm165_vm11 = vcmask 195744  }
  0x8a   :  { %76 = vst.msk [vmem:[#allocation0] sm:$0x1] %vm75_vm12, %v74_v43   ;;  %vm171_vm12 = vcmask 162944  }
  0x8c   :  { %v80_v44 = vpop.permute.xlu0 %79   ;;  %v86_v45 = vpop.permute.xlu1 %85  }
  0x8d   :  { %82 = vst.msk [vmem:[#allocation0] sm:$0x1] %vm81_vm13, %v80_v44   ;;  %vm177_vm13 = vcmask 130144  }
  0x8e   :  { %88 = vst.msk [vmem:[#allocation0] sm:$0x1] %vm87_vm14, %v86_v45   ;;  %vm183_vm14 = vcmask 97344  }
  0x90   :  { %v92_v46 = vpop.permute.xlu0 %91   ;;  %v98_v47 = vpop.permute.xlu1 %97  }
  0x91   :  { %94 = vst.msk [vmem:[#allocation0] sm:$0x1] %vm93_vm15, %v92_v46   ;;  %vm189_vm15 = vcmask 64544  }
  0x92   :  { %100 = vst.msk [vmem:[#allocation0] sm:$0x1] %vm99_vm0, %v98_v47  }
  0x94   :  { %v104_v48 = vpop.permute.xlu0 %103   ;;  %v110_v49 = vpop.permute.xlu1 %109  }
  0x95   :  { %106 = vst.msk [vmem:[#allocation0] sm:$0x1] %vm105_vm1, %v104_v48  }
  0x96   :  { %112 = vst.msk [vmem:[#allocation0] sm:$0x1] %vm111_vm2, %v110_v49  }
  0x98   :  { %v116_v50 = vpop.permute.xlu0 %115   ;;  %v122_v51 = vpop.permute.xlu1 %121  }
  0x99   :  { %118 = vst.msk [vmem:[#allocation0] sm:$0x1] %vm117_vm3, %v116_v50  }
  0x9a   :  { %124 = vst.msk [vmem:[#allocation0] sm:$0x1] %vm123_vm4, %v122_v51  }
  0x9c   :  { %v128_v52 = vpop.permute.xlu0 %127   ;;  %v134_v53 = vpop.permute.xlu1 %133  }
  0x9d   :  { %130 = vst.msk [vmem:[#allocation0] sm:$0x1] %vm129_vm5, %v128_v52  }
  0x9e   :  { %136 = vst.msk [vmem:[#allocation0] sm:$0x1] %vm135_vm6, %v134_v53  }
  0xa0   :  { %v140_v54 = vpop.permute.xlu0 %139   ;;  %v146_v55 = vpop.permute.xlu1 %145  }
  0xa1   :  { %142 = vst.msk [vmem:[#allocation0] sm:$0x1] %vm141_vm7, %v140_v54  }
  0xa2   :  { %148 = vst.msk [vmem:[#allocation0] sm:$0x1] %vm147_vm8, %v146_v55  }
  0xa4   :  { %v152_v56 = vpop.permute.xlu0 %151   ;;  %v158_v57 = vpop.permute.xlu1 %157  }
  0xa5   :  { %154 = vst.msk [vmem:[#allocation0] sm:$0x1] %vm153_vm9, %v152_v56  }
  0xa6   :  { %160 = vst.msk [vmem:[#allocation0] sm:$0x1] %vm159_vm10, %v158_v57  }
  0xa8   :  { %v164_v58 = vpop.permute.xlu0 %163   ;;  %v170_v59 = vpop.permute.xlu1 %169  }
  0xa9   :  { %166 = vst.msk [vmem:[#allocation0] sm:$0x1] %vm165_vm11, %v164_v58  }
  0xaa   :  { %172 = vst.msk [vmem:[#allocation0] sm:$0x1] %vm171_vm12, %v170_v59  }
  0xac   :  { %v176_v60 = vpop.permute.xlu0 %175   ;;  %v182_v61 = vpop.permute.xlu1 %181  }
  0xad   :  { %178 = vst.msk [vmem:[#allocation0] sm:$0x1] %vm177_vm13, %v176_v60  }
  0xae   :  { %184 = vst.msk [vmem:[#allocation0] sm:$0x1] %vm183_vm14, %v182_v61  }
  0xb0   :  { %v188_v62 = vpop.permute.xlu0 %187  }
  0xb1   :  { %190 = vst.msk [vmem:[#allocation0] sm:$0x1] %vm189_vm15, %v188_v62  }
  0xb8   :  { %v194_v63 = vld [vmem:[#allocation0] sm:$0x1] }
  0xb9   :  { %196 = vst [vmem:[%s400_s1] sm:$0x1] %v194_v63 }

// kernel: pre_residual_block.1
= control target key start
LH: loop header
LB: loop body
LE: loop exit
PB: predicated region body
PF: predicated region fallthrough
CT: control target
= control target key end

     0   :  { %s1495_s24 = smov 0   ;;  %s1885_s0 = inlined_call_operand.vmem [shape: f32[2,8,128], index: 0, kind: input, shape index: {}]   ;;  %s1886_s1 = inlined_call_operand.vmem [shape: f32[1,128], index: 1, kind: input, shape index: {}]   ;;  %s1887_s2 = inlined_call_operand.vmem [shape: f32[1,128], index: 2, kind: input, shape index: {}]   ;;  %s1888_s3 = inlined_call_operand.vmem [shape: f32[3,128,128], index: 3, kind: input, shape index: {}]   ;;  %s1889_s4 = inlined_call_operand.vmem [shape: f32[1,128], index: 4, kind: input, shape index: {}]   ;;  %s1890_s5 = inlined_call_operand.vmem [shape: f32[1,128], index: 5, kind: input, shape index: {}]   ;;  %s1891_s6 = inlined_call_operand.vmem [shape: f32[3,128,128], index: 6, kind: input, shape index: {}]   ;;  %s1892_s7 = inlined_call_operand.vmem [shape: f32[2,8,128], index: 7, kind: output, shape index: {}]  }
   0x1 LB: > { %s896_s25 = sadd.s32 4294967295, %s1450_s24   ;;  %p900_p0 = scmp.ge.s32.totalorder %s1450_s24, 1  ;;  %s1450_s24 = sphi %s1495_s24, %s17_s24  }
   0x2   : > { %p236_p1 = scmp.lt.s32.totalorder %s1450_s24, 3 }
   0x4   : > { %p237_p2 = pnand %p900_p0, %p236_p1 }
   0x5   : > { %v905_v0 = vld [vmem:[%s1888_s3 + $0x80] sm:$0xff] (!%p237_p2)  ;;  %v906_v1 = vld [vmem:[%s1888_s3 + $0x88] sm:$0xff] (!%p237_p2)  ;;  %v907_v2 = vld [vmem:[%s1888_s3 + $0x90] sm:$0xff] (!%p237_p2)  ;;  %v1452_v3 = vmov (!%p237_p2), 0.0|0.0   ;;  %v1453_v6 = vmov (!%p237_p2), 0.0   ;;  %vm1454_vm0 = vmmov (!%p237_p2), 0  }
   0x6   : > { %240 = sbr.rel (%p237_p2) target bundleno = 602 (0x25a), region = 48  ;;  %1285 = vmatprep.subr.bf16.mxu0 (!%p237_p2), %v1452_v3  ;;  %v1286_v4 = vpack.c.bf16 (!%p237_p2), %v906_v1, %v905_v0  ;;  %v908_v5 = vld [vmem:[%s1888_s3 + $0x98] sm:$0xff] (!%p237_p2)  ;;  %274 = vst [vmem:[#allocation2] sm:$0x1] (!%p237_p2), %v1453_v6  ;;  %275 = vst [vmem:[#allocation2 + $0x9] sm:$0x1] (!%p237_p2), %v1453_v6  ;;  %1107 = vmatprep.mubr.msk.f32.mxu0 (!%p237_p2), %vm1454_vm0, %v1453_v6 }
   0x7   : > { %p266_p3 = scmp.lt.s32.totalorder (!%p237_p2), %s896_s25, 1  ;;  %1357 = vmatprep.subr.bf16.mxu1 (!%p237_p2), %v1452_v3  ;;  %1212 = vmatprep.mubr.msk.f32.mxu1 (!%p237_p2), %vm1454_vm0, %v1453_v6  ;;  %v1289_v7 = vpack.c.bf16 (!%p237_p2), %v908_v5, %v907_v2  ;;  %v909_v8 = vld [vmem:[%s1888_s3 + $0xa0] sm:$0xff] (!%p237_p2)  ;;  %v910_v9 = vld [vmem:[%s1888_s3 + $0xa8] sm:$0xff] (!%p237_p2)  ;;  %v911_v14 = vld [vmem:[%s1888_s3 + $0xb0] sm:$0xff] (!%p237_p2) }
   0x8   : > { %1287 = vmatpush3.bf16.msra.mxu0 (!%p237_p2), %v1286_v4  ;;  %v903_v10 = vld [vmem:[%s1886_s1] ss:$0 sm:$0xff] (!%p237_p2)  ;;  %v1292_v11 = vpack.c.bf16 (!%p237_p2), %v910_v9, %v909_v8  ;;  %v912_v15 = vld [vmem:[%s1888_s3 + $0xb8] sm:$0xff] (!%p237_p2)  ;;  %v914_v20 = vld [vmem:[%s1888_s3 + $0xc8] sm:$0xff] (!%p237_p2) }
   0x9   : > { %1288 = vmatprep.subr.bf16.mxu0 (!%p237_p2), %v1452_v3  ;;  %v904_v13 = vld [vmem:[%s1887_s2] ss:$0 sm:$0xff] (!%p237_p2)  ;;  %v1295_v18 = vpack.c.bf16 (!%p237_p2), %v912_v15, %v911_v14  ;;  %v915_v23 = vld [vmem:[%s1888_s3 + $0xd0] sm:$0xff] (!%p237_p2)  ;;  %v916_v24 = vld [vmem:[%s1888_s3 + $0xd8] sm:$0xff] (!%p237_p2) }
   0xa   : > { %v913_v19 = vld [vmem:[%s1888_s3 + $0xc0] sm:$0xff] (!%p237_p2)  ;;  %v940_v26 = vld [vmem:[%s1891_s6 + $0x88] sm:$0xff] (!%p237_p2)  ;;  %v941_v27 = vld [vmem:[%s1891_s6 + $0x90] sm:$0xff] (!%p237_p2)  ;;  %v1301_v30 = vpack.c.bf16 (!%p237_p2), %v916_v24, %v915_v23 }
   0xb   : > { %v1298_v22 = vpack.c.bf16 (!%p237_p2), %v914_v20, %v913_v19  ;;  %v939_v25 = vld [vmem:[%s1891_s6 + $0x80] sm:$0xff] (!%p237_p2)  ;;  %v942_v29 = vld [vmem:[%s1891_s6 + $0x98] sm:$0xff] (!%p237_p2)  ;;  %v918_v32 = vld [vmem:[%s1888_s3 + $0xe8] sm:$0xff] (!%p237_p2) }
   0xc   : > { %1290 = vmatpush3.bf16.msra.mxu0 (!%p237_p2), %v1289_v7  ;;  %v1358_v28 = vpack.c.bf16 (!%p237_p2), %v940_v26, %v939_v25  ;;  %v917_v31 = vld [vmem:[%s1888_s3 + $0xe0] sm:$0xff] (!%p237_p2)  ;;  %v1361_v33 = vpack.c.bf16 (!%p237_p2), %v942_v29, %v941_v27  ;;  %v944_v35 = vld [vmem:[%s1891_s6 + $0xa8] sm:$0xff] (!%p237_p2)  ;;  %v919_v37 = vld [vmem:[%s1888_s3 + $0xf0] sm:$0xff] (!%p237_p2) }
   0xd   : > { %s1894_s25 = smov (!%p266_p3, %s896_s25), 1  ;;  %1291 = vmatprep.subr.bf16.mxu0 %v1452_v3  ;;  %v943_v34 = vld [vmem:[%s1891_s6 + $0xa0] sm:$0xff]  ;;  %v1304_v36 = vpack.c.bf16 %v918_v32, %v917_v31  ;;  %v920_v38 = vld [vmem:[%s1888_s3 + $0xf8] sm:$0xff]  ;;  %v945_v40 = vld [vmem:[%s1891_s6 + $0xb0] sm:$0xff] }
   0xe   : > { %s901_s15 = sshll.u32 %s1894_s25, 3  ;;  %1359 = vmatpush3.bf16.msra.mxu1 %v1358_v28  ;;  %v1364_v39 = vpack.c.bf16 %v944_v35, %v943_v34  ;;  %v946_v41 = vld [vmem:[%s1891_s6 + $0xb8] sm:$0xff]  ;;  %v1307_v42 = vpack.c.bf16 %v920_v38, %v919_v37  ;;  %v296_v43 = vld [vmem:[%s1888_s3] sm:$0xff]  ;;  %v297_v44 = vld [vmem:[%s1888_s3 + $0x8] sm:$0xff] }
   0xf   : > { %s269_s20 = scalar_lea.vmem %s1885_s0, %s901_s15  ;;  %1360 = vmatprep.subr.bf16.mxu1 %v1452_v3  ;;  %v1367_v45 = vpack.c.bf16 %v946_v41, %v945_v40  ;;  %v947_v46 = vld [vmem:[%s1891_s6 + $0xc0] sm:$0xff]  ;;  %v948_v47 = vld [vmem:[%s1891_s6 + $0xc8] sm:$0xff]  ;;  %v1310_v48 = vpack.c.bf16 %v297_v44, %v296_v43  ;;  %v298_v49 = vld [vmem:[%s1888_s3 + $0x10] sm:$0xff]  ;;  %s273_s8 = scalar_lea.vmem %s1892_s7, %s901_s15 }
  0x10   : > { %v1541_v12 = vld [vmem:[%s269_s20] sm:$0xff]  ;;  %1293 = vmatpush3.bf16.msra.mxu0 %v1292_v11  ;;  %v299_v50 = vld [vmem:[%s1888_s3 + $0x18] sm:$0xff]  ;;  %v1370_v51 = vpack.c.bf16 %v948_v47, %v947_v46  ;;  %v301_v54 = vld [vmem:[%s1888_s3 + $0x28] sm:$0xff] }
  0x11   : > { %v284_v16 = vmul.f32 %v903_v10, %v1541_v12  ;;  %1294 = vmatprep.subr.bf16.mxu0 %v1452_v3  ;;  %v1313_v52 = vpack.c.bf16 %v299_v50, %v298_v49  ;;  %v300_v53 = vld [vmem:[%s1888_s3 + $0x20] sm:$0xff]  ;;  %v302_v56 = vld [vmem:[%s1888_s3 + $0x30] sm:$0xff]  ;;  %v303_v57 = vld [vmem:[%s1888_s3 + $0x38] sm:$0xff] }
  0x12   : > { %1362 = vmatpush3.bf16.msra.mxu1 %v1361_v33  ;;  %v1316_v55 = vpack.c.bf16 %v301_v54, %v300_v53  ;;  %v1319_v58 = vpack.c.bf16 %v303_v57, %v302_v56  ;;  %v304_v59 = vld [vmem:[%s1888_s3 + $0x40] sm:$0xff]  ;;  %v305_v60 = vld [vmem:[%s1888_s3 + $0x48] sm:$0xff]  ;;  %v306_v62 = vld [vmem:[%s1888_s3 + $0x50] sm:$0xff] }
  0x13   : > { %v292_v17 = vadd.f32 %v904_v13, %v284_v16  ;;  %1363 = vmatprep.subr.bf16.mxu1 %v1452_v3  ;;  %v1322_v61 = vpack.c.bf16 %v305_v60, %v304_v59  ;;  %v307_v63 = vld [vmem:[%s1888_s3 + $0x58] sm:$0xff]  ;;  %v308_v1 = vld [vmem:[%s1888_s3 + $0x60] sm:$0xff]  ;;  %v309_v2 = vld [vmem:[%s1888_s3 + $0x68] sm:$0xff] }
  0x14   : > { %1296 = vmatpush3.bf16.msra.mxu0 %v1295_v18  ;;  %v1325_v0 = vpack.c.bf16 %v307_v63, %v306_v62  ;;  %v1328_v4 = vpack.c.bf16 %v309_v2, %v308_v1  ;;  %v310_v5 = vld [vmem:[%s1888_s3 + $0x70] sm:$0xff]  ;;  %v311_v7 = vld [vmem:[%s1888_s3 + $0x78] sm:$0xff]  ;;  %v921_v9 = vld [vmem:[%s1888_s3 + $0x100] sm:$0xff] }
  0x15   : > { %v293_v21 = vmax.f32 %v292_v17, 0.0  ;;  %1297 = vmatprep.subr.bf16.mxu0 %v1452_v3  ;;  %v1331_v8 = vpack.c.bf16 %v311_v7, %v310_v5  ;;  %v922_v10 = vld [vmem:[%s1888_s3 + $0x108] sm:$0xff]  ;;  %v923_v14 = vld [vmem:[%s1888_s3 + $0x110] sm:$0xff]  ;;  %v924_v15 = vld [vmem:[%s1888_s3 + $0x118] sm:$0xff] }
  0x16   : > { %1365 = vmatpush3.bf16.msra.mxu1 %v1364_v39  ;;  %v1334_v13 = vpack.c.bf16 %v922_v10, %v921_v9  ;;  %v1337_v16 = vpack.c.bf16 %v924_v15, %v923_v14  ;;  %v925_v17 = vld [vmem:[%s1888_s3 + $0x120] sm:$0xff]  ;;  %v926_v18 = vld [vmem:[%s1888_s3 + $0x128] sm:$0xff]  ;;  %v927_v20 = vld [vmem:[%s1888_s3 + $0x130] sm:$0xff] }
  0x17   : > { %294 = vst [vmem:[#allocation2 + $0x1] sm:$0xff] %v293_v21  ;;  %1366 = vmatprep.subr.bf16.mxu1 %v1452_v3  ;;  %v1340_v19 = vpack.c.bf16 %v926_v18, %v925_v17  ;;  %v929_v23 = vld [vmem:[%s1888_s3 + $0x140] sm:$0xff]  ;;  %v930_v24 = vld [vmem:[%s1888_s3 + $0x148] sm:$0xff]  ;;  %v931_v26 = vld [vmem:[%s1888_s3 + $0x150] sm:$0xff] }
  0x18   : > { %1299 = vmatpush3.bf16.msra.mxu0 %v1298_v22  ;;  %v1346_v25 = vpack.c.bf16 %v930_v24, %v929_v23  ;;  %v932_v27 = vld [vmem:[%s1888_s3 + $0x158] sm:$0xff]  ;;  %v933_v29 = vld [vmem:[%s1888_s3 + $0x160] sm:$0xff]  ;;  %v935_v32 = vld [vmem:[%s1888_s3 + $0x170] sm:$0xff] }
  0x19   : > { %1300 = vmatprep.subr.bf16.mxu0 %v1452_v3  ;;  %v1349_v28 = vpack.c.bf16 %v932_v27, %v931_v26  ;;  %v936_v33 = vld [vmem:[%s1888_s3 + $0x178] sm:$0xff]  ;;  %v951_v39 = vld [vmem:[%s1891_s6 + $0xe0] sm:$0xff]  ;;  %v952_v40 = vld [vmem:[%s1891_s6 + $0xe8] sm:$0xff] }
  0x1a   : > { %1368 = vmatpush3.bf16.msra.mxu1 %v1367_v45  ;;  %v1355_v34 = vpack.c.bf16 %v936_v33, %v935_v32  ;;  %v950_v37 = vld [vmem:[%s1891_s6 + $0xd8] sm:$0xff]  ;;  %v1376_v41 = vpack.c.bf16 %v952_v40, %v951_v39  ;;  %v937_v45 = vld [vmem:[%s1889_s4] ss:$0 sm:$0xff]  ;;  %v583_v59 = vld [vmem:[%s1891_s6 + $0x28] sm:$0xff] }
  0x1b   : > { %1369 = vmatprep.subr.bf16.mxu1 %v1452_v3  ;;  %v954_v43 = vld [vmem:[%s1891_s6 + $0xf8] sm:$0xff]  ;;  %v938_v47 = vld [vmem:[%s1890_s5] ss:$0 sm:$0xff]  ;;  %v587_v1 = vld [vmem:[%s1891_s6 + $0x48] sm:$0xff] }
  0x1c   : > { %1302 = vmatpush3.bf16.msra.mxu0 %v1301_v30  ;;  %v934_v30 = vld [vmem:[%s1888_s3 + $0x168] sm:$0xff]  ;;  %v578_v50 = vld [vmem:[%s1891_s6] sm:$0xff]  ;;  %v581_v56 = vld [vmem:[%s1891_s6 + $0x18] sm:$0xff] }
  0x1d   : > { %1303 = vmatprep.subr.bf16.mxu0 %v1452_v3  ;;  %v1352_v31 = vpack.c.bf16 %v934_v30, %v933_v29  ;;  %v585_v62 = vld [vmem:[%s1891_s6 + $0x38] sm:$0xff]  ;;  %v591_v9 = vld [vmem:[%s1891_s6 + $0x68] sm:$0xff]  ;;  %v955_v15 = vld [vmem:[%s1891_s6 + $0x100] sm:$0xff] }
  0x1e   : > { %1371 = vmatpush3.bf16.msra.mxu1 %v1370_v51  ;;  %v295_v11 = vld [vmem:[#allocation2] sm:$0xff]  ;;  %v579_v51 = vld [vmem:[%s1891_s6 + $0x8] sm:$0xff]  ;;  %v589_v5 = vld [vmem:[%s1891_s6 + $0x58] sm:$0xff] }
  0x1f   : > { %1372 = vmatprep.subr.bf16.mxu1 %v1452_v3  ;;  %v470_v35 = vld [vmem:[#allocation2 + $0x2] sm:$0xff]  ;;  %v1382_v53 = vpack.c.bf16 %v579_v51, %v578_v50  ;;  %v957_v18 = vld [vmem:[%s1891_s6 + $0x110] sm:$0xff] }
  0x20   : > { %1305 = vmatpush3.bf16.msra.mxu0 %v1304_v36  ;;  %v949_v36 = vld [vmem:[%s1891_s6 + $0xd0] sm:$0xff]  ;;  %v960_v23 = vld [vmem:[%s1891_s6 + $0x128] sm:$0xff]  ;;  %v963_v27 = vld [vmem:[%s1891_s6 + $0x140] sm:$0xff] }
  0x21   : > { %1306 = vmatprep.subr.bf16.mxu0 %v1452_v3  ;;  %v1373_v38 = vpack.c.bf16 %v950_v37, %v949_v36  ;;  %v965_v30 = vld [vmem:[%s1891_s6 + $0x150] sm:$0xff]  ;;  %v967_v33 = vld [vmem:[%s1891_s6 + $0x160] sm:$0xff]  ;;  %v970_v37 = vld [vmem:[%s1891_s6 + $0x178] sm:$0xff] }
  0x22   : > { %v969_v36 = vld [vmem:[%s1891_s6 + $0x170] sm:$0xff] }
  0x23   : > { %1374 = vmatpush3.bf16.msra.mxu1 %v1373_v38  ;;  %v1427_v38 = vpack.c.bf16 %v970_v37, %v969_v36 }
  0x24   : > { %1308 = vmatpush3.bf16.msra.mxu0 %v1307_v42  ;;  %1375 = vmatprep.subr.bf16.mxu1 %v1452_v3  ;;  %v953_v42 = vld [vmem:[%s1891_s6 + $0xf0] sm:$0xff] }
  0x25   : > { %1309 = vmatprep.subr.bf16.mxu0 %v1452_v3  ;;  %v1379_v44 = vpack.c.bf16 %v954_v43, %v953_v42 }
  0x27   : > { %1108 = vmatmul.mubr.f32.vlgmr.msra.gmra.mrb[0].mxu0 %v293_v21  ;;  %v928_v21 = vld [vmem:[%s1888_s3 + $0x138] sm:$0xff]  ;;  %1377 = vmatpush3.bf16.msra.mxu1 %v1376_v41 }
  0x28   : > { %1311 = vmatpush3.bf16.msra.mxu0 %v1310_v48  ;;  %1142 = vmatprep.mubr.msk.f32.mxu0 %vm1454_vm0, %v1453_v6  ;;  %v1343_v22 = vpack.c.bf16 %v928_v21, %v927_v20 }
  0x29   : > { %1312 = vmatprep.subr.bf16.mxu0 %v1452_v3  ;;  %1378 = vmatprep.subr.bf16.mxu1 %v1452_v3 }
  0x2b   : > { %1380 = vmatpush3.bf16.msra.mxu1 %v1379_v44 }
  0x2c   : > { %1314 = vmatpush3.bf16.msra.mxu0 %v1313_v52  ;;  %1381 = vmatprep.subr.bf16.mxu1 %v1452_v3 }
  0x2d   : > { %1315 = vmatprep.subr.bf16.mxu0 %v1452_v3 }
  0x30   : > { %1317 = vmatpush3.bf16.msra.mxu0 %v1316_v55  ;;  %v580_v55 = vld [vmem:[%s1891_s6 + $0x10] sm:$0xff] }
  0x31   : > { %1318 = vmatprep.subr.bf16.mxu0 %v1452_v3  ;;  %v1385_v57 = vpack.c.bf16 %v581_v56, %v580_v55 }
  0x34   : > { %1320 = vmatpush3.bf16.msra.mxu0 %v1319_v58  ;;  %v582_v58 = vld [vmem:[%s1891_s6 + $0x20] sm:$0xff] }
  0x35   : > { %1321 = vmatprep.subr.bf16.mxu0 %v1452_v3  ;;  %v1388_v60 = vpack.c.bf16 %v583_v59, %v582_v58 }
  0x38   : > { %1323 = vmatpush3.bf16.msra.mxu0 %v1322_v61  ;;  %v584_v61 = vld [vmem:[%s1891_s6 + $0x30] sm:$0xff] }
  0x39   : > { %1324 = vmatprep.subr.bf16.mxu0 %v1452_v3  ;;  %v1391_v63 = vpack.c.bf16 %v585_v62, %v584_v61 }
  0x3c   : > { %1326 = vmatpush3.bf16.msra.mxu0 %v1325_v0  ;;  %v586_v0 = vld [vmem:[%s1891_s6 + $0x40] sm:$0xff] }
  0x3d   : > { %1327 = vmatprep.subr.bf16.mxu0 %v1452_v3  ;;  %v1394_v2 = vpack.c.bf16 %v587_v1, %v586_v0 }
  0x40   : > { %1329 = vmatpush3.bf16.msra.mxu0 %v1328_v4  ;;  %v588_v4 = vld [vmem:[%s1891_s6 + $0x50] sm:$0xff] }
  0x41   : > { %1330 = vmatprep.subr.bf16.mxu0 %v1452_v3  ;;  %v1397_v7 = vpack.c.bf16 %v589_v5, %v588_v4 }
  0x44   : > { %1332 = vmatpush3.bf16.msra.mxu0 %v1331_v8  ;;  %v590_v8 = vld [vmem:[%s1891_s6 + $0x60] sm:$0xff] }
  0x45   : > { %1333 = vmatprep.subr.bf16.mxu0 %v1452_v3  ;;  %v1400_v10 = vpack.c.bf16 %v591_v9, %v590_v8 }
  0x47   : > { %1143 = vmatmul.mubr.f32.vlgmr.msra.gmra.mrb[0].mxu0 %v295_v11  ;;  %v592_v11 = vld [vmem:[%s1891_s6 + $0x70] sm:$0xff] }
  0x48   : > { %1335 = vmatpush3.bf16.msra.mxu0 %v1334_v13  ;;  %1177 = vmatprep.mubr.msk.f32.mxu0 %vm1454_vm0, %v1453_v6  ;;  %v593_v13 = vld [vmem:[%s1891_s6 + $0x78] sm:$0xff] }
  0x49   : > { %1336 = vmatprep.subr.bf16.mxu0 %v1452_v3  ;;  %v1403_v14 = vpack.c.bf16 %v593_v13, %v592_v11 }
  0x4c   : > { %1338 = vmatpush3.bf16.msra.mxu0 %v1337_v16  ;;  %v956_v16 = vld [vmem:[%s1891_s6 + $0x108] sm:$0xff] }
  0x4d   : > { %1339 = vmatprep.subr.bf16.mxu0 %v1452_v3  ;;  %v1406_v17 = vpack.c.bf16 %v956_v16, %v955_v15 }
  0x50   : > { %1341 = vmatpush3.bf16.msra.mxu0 %v1340_v19  ;;  %v958_v19 = vld [vmem:[%s1891_s6 + $0x118] sm:$0xff] }
  0x51   : > { %1342 = vmatprep.subr.bf16.mxu0 %v1452_v3  ;;  %v1409_v21 = vpack.c.bf16 %v958_v19, %v957_v18 }
  0x54   : > { %1344 = vmatpush3.bf16.msra.mxu0 %v1343_v22  ;;  %v959_v22 = vld [vmem:[%s1891_s6 + $0x120] sm:$0xff] }
  0x55   : > { %1345 = vmatprep.subr.bf16.mxu0 %v1452_v3  ;;  %v1412_v24 = vpack.c.bf16 %v960_v23, %v959_v22 }
  0x58   : > { %1347 = vmatpush3.bf16.msra.mxu0 %v1346_v25  ;;  %v961_v25 = vld [vmem:[%s1891_s6 + $0x130] sm:$0xff] }
  0x59   : > { %1348 = vmatprep.subr.bf16.mxu0 %v1452_v3 }
  0x5c   : > { %1350 = vmatpush3.bf16.msra.mxu0 %v1349_v28  ;;  %v964_v28 = vld [vmem:[%s1891_s6 + $0x148] sm:$0xff] }
  0x5d   : > { %1351 = vmatprep.subr.bf16.mxu0 %v1452_v3  ;;  %v1418_v29 = vpack.c.bf16 %v964_v28, %v963_v27 }
  0x60   : > { %1353 = vmatpush3.bf16.msra.mxu0 %v1352_v31  ;;  %v966_v31 = vld [vmem:[%s1891_s6 + $0x158] sm:$0xff] }
  0x61   : > { %1354 = vmatprep.subr.bf16.mxu0 %v1452_v3  ;;  %v1421_v32 = vpack.c.bf16 %v966_v31, %v965_v30 }
  0x64   : > { %1356 = vmatpush3.bf16.msra.mxu0 %v1355_v34  ;;  %v968_v34 = vld [vmem:[%s1891_s6 + $0x168] sm:$0xff] }
  0x67   : > { %1178 = vmatmul.mubr.f32.vlgmr.msra.gmra.mrb[0].mxu0 %v470_v35  ;;  %v1424_v35 = vpack.c.bf16 %v968_v34, %v967_v33 }
 0x13a   : > { %v554_v46 = vpop.f32.mrb[0].mxu0 }
 0x13b   : > { %v566_v48 = vmul.f32 %v937_v45, %v554_v46  ;;  %v1179_v49 = vpop.f32.mrb[1].mxu0 }
 0x13d   : > { %v574_v52 = vadd.f32 %v938_v47, %v566_v48 }
 0x13f   : > { %v575_v54 = vmax.f32 %v574_v52, 0.0 }
 0x141   : > { %576 = vst [vmem:[#allocation2 + $0x1] sm:$0xff] %v575_v54  ;;  %1213 = vmatmul.mubr.f32.vlgmr.msra.gmra.mrb[0].mxu1 %v575_v54 }
 0x142   : > { %1383 = vmatpush3.bf16.msra.mxu1 %v1382_v53  ;;  %1247 = vmatprep.mubr.msk.f32.mxu1 %vm1454_vm0, %v1453_v6 }
 0x143   : > { %1384 = vmatprep.subr.bf16.mxu1 %v1452_v3 }
 0x146   : > { %1386 = vmatpush3.bf16.msra.mxu1 %v1385_v57 }
 0x147   : > { %1387 = vmatprep.subr.bf16.mxu1 %v1452_v3 }
 0x148   : > { %v577_v20 = vld [vmem:[#allocation2] sm:$0xff] }
 0x149   : > { %v752_v39 = vld [vmem:[#allocation2 + $0x2] sm:$0xff] }
 0x14a   : > { %1389 = vmatpush3.bf16.msra.mxu1 %v1388_v60 }
 0x14b   : > { %1390 = vmatprep.subr.bf16.mxu1 %v1452_v3 }
 0x14e   : > { %1392 = vmatpush3.bf16.msra.mxu1 %v1391_v63 }
 0x14f   : > { %1393 = vmatprep.subr.bf16.mxu1 %v1452_v3 }
 0x152   : > { %1395 = vmatpush3.bf16.msra.mxu1 %v1394_v2 }
 0x153   : > { %1396 = vmatprep.subr.bf16.mxu1 %v1452_v3 }
 0x156   : > { %1398 = vmatpush3.bf16.msra.mxu1 %v1397_v7 }
 0x157   : > { %1399 = vmatprep.subr.bf16.mxu1 %v1452_v3 }
 0x15a   : > { %1401 = vmatpush3.bf16.msra.mxu1 %v1400_v10 }
 0x15b   : > { %1402 = vmatprep.subr.bf16.mxu1 %v1452_v3 }
 0x15e   : > { %1404 = vmatpush3.bf16.msra.mxu1 %v1403_v14 }
 0x15f   : > { %1405 = vmatprep.subr.bf16.mxu1 %v1452_v3 }
 0x161   : > { %1248 = vmatmul.mubr.f32.vlgmr.msra.gmra.mrb[2].mxu1 %v577_v20 }
 0x162   : > { %1407 = vmatpush3.bf16.msra.mxu1 %v1406_v17  ;;  %1282 = vmatprep.mubr.msk.f32.mxu1 %vm1454_vm0, %v1453_v6  ;;  %v962_v6 = vld [vmem:[%s1891_s6 + $0x138] sm:$0xff] }
 0x163   : > { %1408 = vmatprep.subr.bf16.mxu1 %v1452_v3  ;;  %v1415_v26 = vpack.c.bf16 %v962_v6, %v961_v25 }
 0x166   : > { %1410 = vmatpush3.bf16.msra.mxu1 %v1409_v21 }
 0x167   : > { %1411 = vmatprep.subr.bf16.mxu1 %v1452_v3 }
 0x16a   : > { %1413 = vmatpush3.bf16.msra.mxu1 %v1412_v24 }
 0x16b   : > { %1414 = vmatprep.subr.bf16.mxu1 %v1452_v3 }
 0x16e   : > { %1416 = vmatpush3.bf16.msra.mxu1 %v1415_v26 }
 0x16f   : > { %1417 = vmatprep.subr.bf16.mxu1 %v1452_v3 }
 0x172   : > { %1419 = vmatpush3.bf16.msra.mxu1 %v1418_v29 }
 0x173   : > { %1420 = vmatprep.subr.bf16.mxu1 %v1452_v3 }
 0x176   : > { %1422 = vmatpush3.bf16.msra.mxu1 %v1421_v32 }
 0x177   : > { %1423 = vmatprep.subr.bf16.mxu1 %v1452_v3 }
 0x17a   : > { %1425 = vmatpush3.bf16.msra.mxu1 %v1424_v35 }
 0x17b   : > { %1426 = vmatprep.subr.bf16.mxu1 %v1452_v3 }
 0x17e   : > { %1428 = vmatpush3.bf16.msra.mxu1 %v1427_v38 }
 0x181   : > { %1283 = vmatmul.mubr.f32.vlgmr.msra.gmra.mrb[4].mxu1 %v752_v39 }
 0x214   : > { %v678_v40 = vpop.f32.mrb[0].mxu1 }
 0x215   : > { %v1214_v41 = vpop.f32.mrb[1].mxu1 }
 0x234   : > { %v748_v42 = vpop.f32.mrb[2].mxu1 }
 0x235   : > { %v749_v43 = vadd.f32 %v748_v42, %v678_v40  ;;  %v1249_v44 = vpop.f32.mrb[3].mxu1 }
 0x254   : > { %v836_v45 = vpop.f32.mrb[4].mxu1 }
 0x255   : > { %v840_v46 = vadd.f32 %v836_v45, %v749_v43  ;;  %v1284_v47 = vpop.f32.mrb[5].mxu1 }
 0x257   : > { %v841_v48 = vadd.f32 %v840_v46, %v1541_v12 }
 0x259   : > { %842 = vst [vmem:[%s273_s8] sm:$0xff] %v841_v48 }
 0x25a PF: > { %s17_s24 = sadd.s32 1, %s1450_s24  }
 0x25b   : > { %p14_p4 = scmp.ge.s32.totalorder %s17_s24, 4  }
 0x25d   :  { %16 = sbr.rel (!%p14_p4) target bundleno = 1 (0x1), region = 82 }

</bundles_post_ra>
